<compile_context>
chip_gen: v5e
topology: v5e:2x2
jax: 0.10.0
libtpu: 0.0.40
codegen_flags: <defaults>
</compile_context>

<pallas_src>
import functools

import jax
import jax.numpy as jnp
import numpy as np
from jax.experimental import pallas as pl
from jax.experimental.pallas import tpu as pltpu

KERNEL_SIZE = 3
NEG_SLOPE = 0.1


def _convtranspose_kernel(x_ref, w_ref, b_ref, o_ref, xs_ref, *,
                          stride, ntaps, c_in, c_in_pad, c_out,
                          l_in, lq_pad, b_blk):
    """One batch block per grid step.

    x_ref:  (b_blk, C_in, L)                     raw input (pre-activation), NCL
    w_ref:  (stride*C_out, ntaps*C_in_pad)       per-phase fused-tap weights
    b_ref:  (stride*C_out, 1)                    per-phase-flattened bias
    o_ref:  (b_blk, stride, C_out, Lq_pad)       per-phase outputs, L on lanes
    xs_ref: (ntaps*C_in_pad, b_blk*Lq_pad)       VMEM scratch (fused-tap RHS)
    """
    # Zero the RHS scratch every step (halo columns + padded channels + lane
    # padding must be zero; do NOT rely on program_id==0 under megacore).
    xs_ref[...] = jnp.zeros_like(xs_ref)

    # Build the fused-tap RHS: xs[j*C_in_pad + c, b*Lq_pad + q] = x_act[c, q - j]
    # (zero where q - j is out of [0, L)).  All slices are static.
    for b in range(b_blk):
        x = x_ref[b]                                     # (C_in, L)
        x = jnp.where(x >= 0, x, NEG_SLOPE * x)          # LeakyReLU(0.1)
        base = b * lq_pad
        for j in range(ntaps):
            xs_ref[j * c_in_pad:j * c_in_pad + c_in,
                   base + j:base + j + l_in] = x

    # Single fused MXU matmul over all phases and all batch elements of the block.
    acc = jnp.dot(w_ref[...], xs_ref[...],
                  preferred_element_type=jnp.float32,
                  precision=jax.lax.Precision.HIGHEST)   # (stride*C_out, b_blk*Lq_pad)
    acc = acc + b_ref[...]                               # bias added exactly once

    # Lane-dense stores (Lq_pad is a multiple of 128); static sublane/lane slices.
    for b in range(b_blk):
        for p in range(stride):
            o_ref[b, p] = acc[p * c_out:(p + 1) * c_out,
                              b * lq_pad:(b + 1) * lq_pad].astype(o_ref.dtype)


def _pick_b_blk(n, lq_pad):
    """Largest divisor of n that keeps the RHS lane width ~>=256 while leaving
    >=2 grid steps (v7x megacore) whenever n >= 2."""
    target = max(1, 256 // lq_pad)
    best = 1
    for d in range(1, n + 1):
        if n % d == 0 and d <= target and (n // d >= 2 or n < 2):
            best = d
    return best


def _vmem_limit_bytes():
    try:
        cap = pltpu.get_tpu_info().vmem_capacity_bytes
        return int(min(cap * 3 // 4, 96 * 1024 * 1024))   # ~48 MiB on v7x, 96 MiB on v5e/v6e
    except Exception:
        return 64 * 1024 * 1024


@functools.partial(jax.jit, static_argnames=("stride",))
def conv_transpose_block(x, weight, bias, *, stride):
    """x: (N, C_in, L) f32.  weight: (C_in, C_out, K) (PyTorch layout).  bias: (C_out,)."""
    n, c_in, l = x.shape
    c_out, k = weight.shape[1], weight.shape[2]
    l_out = (l - 1) * stride + k                        # padding=0, output_padding=0

    ntaps = -(-k // stride)                             # ceil(K / stride) taps per phase
    lq = -(-l_out // stride)                            # per-phase output length (= L + ntaps - 1)
    lq_pad = ((lq + 127) // 128) * 128                  # lane-dense output tiles
    c_in_pad = ((c_in + 7) // 8) * 8                    # f32 sublane pack

    b_blk = _pick_b_blk(n, lq_pad)
    num_steps = n // b_blk

    # Per-phase fused-tap weights (padded channels / padded taps are zero):
    #   w_flat[p*C_out + o, j*C_in_pad + c] = W[c, o, p + j*stride]
    w_pad = jnp.pad(weight, ((0, c_in_pad - c_in), (0, 0), (0, ntaps * stride - k)))
    w_r = w_pad.reshape(c_in_pad, c_out, ntaps, stride)          # kk = j*stride + p -> [j, p]
    w_flat = jnp.transpose(w_r, (3, 1, 2, 0)).reshape(stride * c_out, ntaps * c_in_pad)

    # Per-phase-flattened bias: b_flat[p*C_out + o] = bias[o]
    b_flat = jnp.tile(bias, stride).reshape(stride * c_out, 1)

    out_slab = pl.pallas_call(
        functools.partial(
            _convtranspose_kernel,
            stride=stride, ntaps=ntaps, c_in=c_in, c_in_pad=c_in_pad,
            c_out=c_out, l_in=l, lq_pad=lq_pad, b_blk=b_blk),
        out_shape=jax.ShapeDtypeStruct((n, stride, c_out, lq_pad), jnp.float32),
        grid_spec=pltpu.PrefetchScalarGridSpec(
            num_scalar_prefetch=0,
            grid=(num_steps,),
            in_specs=[
                pl.BlockSpec((b_blk, c_in, l), lambda s: (s, 0, 0)),
                pl.BlockSpec((stride * c_out, ntaps * c_in_pad), lambda s: (0, 0)),
                pl.BlockSpec((stride * c_out, 1), lambda s: (0, 0)),
            ],
            out_specs=pl.BlockSpec((b_blk, stride, c_out, lq_pad),
                                   lambda s: (s, 0, 0, 0)),
            scratch_shapes=[pltpu.VMEM((ntaps * c_in_pad, b_blk * lq_pad), jnp.float32)],
        ),
        compiler_params=pltpu.CompilerParams(
            dimension_semantics=("parallel",),
            vmem_limit_bytes=_vmem_limit_bytes(),
        ),
    )(x, w_flat, b_flat)

    # Phase interleave (layout plumbing only): out[n, o, q*stride + p] = slab[n, p, o, q].
    # Downstream consumers should take `out_slab` directly to skip this pass.
    out = jnp.transpose(out_slab, (0, 2, 3, 1)).reshape(n, c_out, stride * lq_pad)
    return out[:, :, :l_out]


def _reference_numpy(x, weight, bias, stride):
    """Direct PyTorch-semantics reference (LeakyReLU + ConvTranspose1d)."""
    xr = np.asarray(x, np.float32)
    wr = np.asarray(weight, np.float32)
    br = np.asarray(bias, np.float32)
    n, c_in, l = xr.shape
    c_out, k = wr.shape[1], wr.shape[2]
    l_out = (l - 1) * stride + k
    xlr = np.where(xr >= 0, xr, NEG_SLOPE * xr)
    out = np.zeros((n, c_out, l_out), np.float32)
    for b in range(n):
        for li in range(l):
            for kk in range(k):
                out[b, :, li * stride + kk] += xlr[b, :, li] @ wr[:, :, kk]
    out += br[None, :, None]
    return out


if __name__ == "__main__":
    # Module hyperparameters (small, consistent with ConvTranspose1d forward).
    input_size = 8      # C_in
    output_size = 16    # C_out
    stride = 2
    batch = 2
    seq = 16            # L

    key = jax.random.PRNGKey(0)
    kx, kw, kb = jax.random.split(key, 3)

    x = jax.random.normal(kx, (batch, input_size, seq), jnp.float32)
    # PyTorch ConvTranspose1d weight layout: (in_channels, out_channels, kernel_size).
    fan = float(input_size * KERNEL_SIZE)
    bound = 1.0 / np.sqrt(fan)
    weight = jax.random.uniform(
        kw, (input_size, output_size, KERNEL_SIZE), jnp.float32, -bound, bound)
    bias = jax.random.uniform(kb, (output_size,), jnp.float32, -bound, bound)

    out = conv_transpose_block(x, weight, bias, stride=stride)
    out = jax.block_until_ready(out)

    ref = _reference_numpy(x, weight, bias, stride)
    assert out.shape == ref.shape, (out.shape, ref.shape)
    np.testing.assert_allclose(np.asarray(out), ref, rtol=1e-5, atol=1e-5)

    print("KERNEL_OK")
</pallas_src>

<mosaic_0001>
module attributes {stable_mosaic.version = 11 : i64} {
  func.func @_convtranspose_kernel(%arg0: i32, %arg1: memref<1x8x16xf32, #tpu.memory_space<vmem>>, %arg2: memref<32x16xf32, #tpu.memory_space<vmem>>, %arg3: memref<32x1xf32, #tpu.memory_space<vmem>>, %arg4: memref<1x2x16x128xf32, #tpu.memory_space<vmem>>, %arg5: memref<16x128xf32, #tpu.memory_space<vmem>>) attributes {dimension_semantics = [#tpu.dimension_semantics<parallel>], iteration_bounds = array<i64: 2>, scalar_prefetch = 0 : i64, scratch_operands = 1 : i64, tpu.core_type = #tpu.core_type<tc>, window_params = [{transform_indices = @transform_0, window_bounds = array<i64: 1, 8, 16>}, {pipeline_mode = #tpu.pipeline_mode<synchronous>, transform_indices = @transform_1, window_bounds = array<i64: 32, 16>}, {pipeline_mode = #tpu.pipeline_mode<synchronous>, transform_indices = @transform_2, window_bounds = array<i64: 32, 1>}, {transform_indices = @transform_3, window_bounds = array<i64: 1, 2, 16, 128>}]} {
    %cst = arith.constant 0.000000e+00 : f32
    %0 = vector.broadcast %cst : f32 to vector<16x128xf32>
    %c0 = arith.constant 0 : index
    %c0_0 = arith.constant 0 : index
    %1 = vector.load %arg5[%c0, %c0_0] : memref<16x128xf32, #tpu.memory_space<vmem>>, vector<16x128xf32>
    tpu.vector_store %arg5[%c0, %c0_0], %0 {strides = array<i32>} : memref<16x128xf32, #tpu.memory_space<vmem>>, vector<16x128xf32>,
    %c0_1 = arith.constant 0 : index
    %c0_2 = arith.constant 0 : index
    %c0_3 = arith.constant 0 : index
    %2 = vector.load %arg1[%c0_1, %c0_2, %c0_3] : memref<1x8x16xf32, #tpu.memory_space<vmem>>, vector<1x8x16xf32>
    %3 = vector.shape_cast %2 : vector<1x8x16xf32> to vector<8x16xf32>
    %cst_4 = arith.constant 0.000000e+00 : f32
    %4 = vector.broadcast %cst_4 : f32 to vector<8x16xf32>
    %5 = arith.cmpf oge, %3, %4 : vector<8x16xf32>
    %cst_5 = arith.constant 1.000000e-01 : f32
    %6 = vector.broadcast %cst_5 : f32 to vector<8x16xf32>
    %7 = arith.mulf %6, %3 : vector<8x16xf32>
    %8 = arith.select %5, %3, %7 : vector<8x16xi1>, vector<8x16xf32>
    %c0_6 = arith.constant 0 : index
    %c0_7 = arith.constant 0 : index
    %9 = vector.load %arg5[%c0_6, %c0_7] : memref<16x128xf32, #tpu.memory_space<vmem>>, vector<8x16xf32>
    tpu.vector_store %arg5[%c0_6, %c0_7], %8 {strides = array<i32>} : memref<16x128xf32, #tpu.memory_space<vmem>>, vector<8x16xf32>,
    %c8 = arith.constant 8 : index
    %c1 = arith.constant 1 : index
    %10 = vector.load %arg5[%c8, %c1] : memref<16x128xf32, #tpu.memory_space<vmem>>, vector<8x16xf32>
    tpu.vector_store %arg5[%c8, %c1], %8 {strides = array<i32>} : memref<16x128xf32, #tpu.memory_space<vmem>>, vector<8x16xf32>,
    %c0_8 = arith.constant 0 : index
    %c0_9 = arith.constant 0 : index
    %11 = vector.load %arg2[%c0_8, %c0_9] : memref<32x16xf32, #tpu.memory_space<vmem>>, vector<32x16xf32>
    %c0_10 = arith.constant 0 : index
    %c0_11 = arith.constant 0 : index
    %12 = vector.load %arg5[%c0_10, %c0_11] : memref<16x128xf32, #tpu.memory_space<vmem>>, vector<16x128xf32>
    %cst_12 = arith.constant dense<0.000000e+00> : vector<32x128xf32>
    %13 = tpu.matmul %11, %12, %cst_12 {dimension_numbers = #tpu.dot_dimension_numbers<[1], [0], [0], [1], [0, 0, 1, 1], [], []>, precision = #tpu.contract_precision<fp32>} : vector<32x16xf32>, vector<16x128xf32>, vector<32x128xf32> -> vector<32x128xf32>
    %c0_13 = arith.constant 0 : index
    %c0_14 = arith.constant 0 : index
    %14 = vector.load %arg3[%c0_13, %c0_14] : memref<32x1xf32, #tpu.memory_space<vmem>>, vector<32x1xf32>
    %15 = vector.broadcast %14 : vector<32x1xf32> to vector<32x128xf32>
    %16 = arith.addf %13, %15 : vector<32x128xf32>
    %17 = vector.extract_strided_slice %16 {offsets = [0, 0], sizes = [16, 128], strides = [1, 1]} : vector<32x128xf32> to vector<16x128xf32>
    %c0_15 = arith.constant 0 : index
    %c0_16 = arith.constant 0 : index
    %c0_17 = arith.constant 0 : index
    %c0_18 = arith.constant 0 : index
    %18 = vector.load %arg4[%c0_15, %c0_16, %c0_17, %c0_18] : memref<1x2x16x128xf32, #tpu.memory_space<vmem>>, vector<1x1x16x128xf32>
    %19 = vector.shape_cast %18 : vector<1x1x16x128xf32> to vector<16x128xf32>
    %20 = vector.shape_cast %17 : vector<16x128xf32> to vector<1x1x16x128xf32>
    tpu.vector_store %arg4[%c0_15, %c0_16, %c0_17, %c0_18], %20 {strides = array<i32>} : memref<1x2x16x128xf32, #tpu.memory_space<vmem>>, vector<1x1x16x128xf32>,
    %21 = vector.extract_strided_slice %16 {offsets = [16, 0], sizes = [16, 128], strides = [1, 1]} : vector<32x128xf32> to vector<16x128xf32>
    %c0_19 = arith.constant 0 : index
    %c1_20 = arith.constant 1 : index
    %c0_21 = arith.constant 0 : index
    %c0_22 = arith.constant 0 : index
    %22 = vector.load %arg4[%c0_19, %c1_20, %c0_21, %c0_22] : memref<1x2x16x128xf32, #tpu.memory_space<vmem>>, vector<1x1x16x128xf32>
    %23 = vector.shape_cast %22 : vector<1x1x16x128xf32> to vector<16x128xf32>
    %24 = vector.shape_cast %21 : vector<16x128xf32> to vector<1x1x16x128xf32>
    tpu.vector_store %arg4[%c0_19, %c1_20, %c0_21, %c0_22], %24 {strides = array<i32>} : memref<1x2x16x128xf32, #tpu.memory_space<vmem>>, vector<1x1x16x128xf32>,
    return
  }
  func.func @transform_0(%arg0: i32) -> (i32, i32, i32) {
    %c0_i32 = arith.constant 0 : i32
    %c0_i32_0 = arith.constant 0 : i32
    %c0_i32_1 = arith.constant 0 : i32
    return %arg0, %c0_i32, %c0_i32_0 : i32, i32, i32
  }
  func.func @transform_1(%arg0: i32) -> (i32, i32) {
    %c0_i32 = arith.constant 0 : i32
    %c0_i32_0 = arith.constant 0 : i32
    %c0_i32_1 = arith.constant 0 : i32
    return %c0_i32, %c0_i32_0 : i32, i32
  }
  func.func @transform_2(%arg0: i32) -> (i32, i32) {
    %c0_i32 = arith.constant 0 : i32
    %c0_i32_0 = arith.constant 0 : i32
    %c0_i32_1 = arith.constant 0 : i32
    return %c0_i32, %c0_i32_0 : i32, i32
  }
  func.func @transform_3(%arg0: i32) -> (i32, i32, i32, i32) {
    %c0_i32 = arith.constant 0 : i32
    %c0_i32_0 = arith.constant 0 : i32
    %c0_i32_1 = arith.constant 0 : i32
    %c0_i32_2 = arith.constant 0 : i32
    return %arg0, %c0_i32, %c0_i32_0, %c0_i32_1 : i32, i32, i32, i32
  }
}

</mosaic_0001>

<bundles_post_ra>
// kernel: tile.8
= control target key start
LH: loop header
LB: loop body
LE: loop exit
PB: predicated region body
PF: predicated region fallthrough
CT: control target
= control target key end

     0   :  { %s22_s0 = inlined_call_operand.vmem [shape: f32[16], index: 0, kind: input, shape index: {}]   ;;  %s23_s1 = inlined_call_operand.vmem [shape: f32[2,16], index: 1, kind: output, shape index: {}]  }
   0x1   :  { %v4_v0 = vld [vmem:[%s22_s0] ss:$0 sm:$0xff] }
   0x2   :  { %5 = vst [vmem:[%s23_s1] sm:$0x3] %v4_v0 }

// kernel: tile.0
= control target key start
LH: loop header
LB: loop body
LE: loop exit
PB: predicated region body
PF: predicated region fallthrough
CT: control target
= control target key end

     0   :  { %s130_s8 = smov 127   ;;  %s131_s9 = smov 123   ;;  %vm7_vm0 = vcmask 7168   ;;  %s221_s0 = inlined_call_operand.vmem [shape: f32[2,16], index: 0, kind: input, shape index: {}]   ;;  %s222_s1 = inlined_call_operand.vmem [shape: f32[32,1], index: 1, kind: output, shape index: {}]  }
   0x1   :  { %v4_v0 = vld [vmem:[%s221_s0] sm:$0x3]  ;;  %s129_s0 = smov 125   ;;  %s132_s10 = smov 124  }
   0x2   :  { %5 = vst [vmem:[#allocation0] sm:$0x3] %v4_v0  ;;  %s133_s11 = smov 126   ;;  %s134_s12 = smov 122  }
   0x3   :  { %s135_s13 = smov 120   ;;  %s136_s14 = smov 121  }
   0x4   :  { %s137_s15 = smov 119   ;;  %s138_s16 = smov 117  }
   0x5   :  { %s139_s17 = smov 118   ;;  %s140_s18 = smov 116  }
   0x6   :  { %s141_s19 = smov 114   ;;  %s142_s20 = smov 115  }
   0x7   :  { %s143_s21 = smov 113  }
   0x9   :  { %v21_v1 = vld [vmem:[#allocation0] sm:$0x3]  }
   0xa   :  { %v9_v2 = vld [vmem:[#allocation0] sm:$0x3]   ;;  %22 = vrot.lane.b32.xlu1 %v21_v1, %s129_s0 }
   0xb   :  { %10 = vrot.lane.b32.xlu0 %v9_v2, %s130_s8  ;;  %v33_v3 = vld [vmem:[#allocation0] sm:$0x3]  }
   0xc   :  { %34 = vrot.lane.b32.xlu2 %v33_v3, %s131_s9  ;;  %v27_v4 = vld [vmem:[#allocation0] sm:$0x3]  }
   0xd   :  { %v15_v5 = vld [vmem:[#allocation0] sm:$0x3]  }
   0xe   :  { %v39_v6 = vld [vmem:[#allocation0] sm:$0x3]  }
   0xf   :  { %v51_v7 = vld [vmem:[#allocation0] sm:$0x3]  }
  0x10   :  { %v45_v8 = vld [vmem:[#allocation0] sm:$0x3]  }
  0x11   :  { %v57_v9 = vld [vmem:[#allocation0] sm:$0x3]  }
  0x12   :  { %28 = vrot.lane.b32.xlu1 %v27_v4, %s132_s10  ;;  %v69_v10 = vld [vmem:[#allocation0] sm:$0x3]  }
  0x13   :  { %16 = vrot.lane.b32.xlu0 %v15_v5, %s133_s11  ;;  %v63_v11 = vld [vmem:[#allocation0] sm:$0x3]  }
  0x14   :  { %40 = vrot.lane.b32.xlu2 %v39_v6, %s134_s12  ;;  %v75_v12 = vld [vmem:[#allocation0] sm:$0x3]  }
  0x15   :  { %v87_v13 = vld [vmem:[#allocation0] sm:$0x3]  }
  0x16   :  { %v81_v14 = vld [vmem:[#allocation0] sm:$0x3]  }
  0x17   :  { %v93_v15 = vld [vmem:[#allocation0] sm:$0x3]  }
  0x18   :  { %v6_v21 = vld [vmem:[#allocation0] sm:$0x3]  }
  0x19   :  { %8 = vst.msk [vmem:[%s222_s1] ss:$16 sm:$0x3] %vm7_vm0, %v6_v21  }
  0x1a   :  { %52 = vrot.lane.b32.xlu1 %v51_v7, %s135_s13 }
  0x1b   :  { %46 = vrot.lane.b32.xlu0 %v45_v8, %s136_s14 }
  0x1c   :  { %58 = vrot.lane.b32.xlu2 %v57_v9, %s137_s15 }
  0x22   :  { %70 = vrot.lane.b32.xlu1 %v69_v10, %s138_s16 }
  0x23   :  { %64 = vrot.lane.b32.xlu0 %v63_v11, %s139_s17 }
  0x24   :  { %76 = vrot.lane.b32.xlu2 %v75_v12, %s140_s18 }
  0x2a   :  { %88 = vrot.lane.b32.xlu1 %v87_v13, %s141_s19 }
  0x2b   :  { %82 = vrot.lane.b32.xlu0 %v81_v14, %s142_s20 }
  0x2c   :  { %94 = vrot.lane.b32.xlu2 %v93_v15, %s143_s21 }
  0x66   :  { %v35_v16 = vpop.permute.xlu2 %34  }
  0x67   :  { %103 = vst.msk [vmem:[%s222_s1 + $0x5] ss:$16 sm:$0x3] %vm7_vm0, %v35_v16  }
  0x6e   :  { %v41_v17 = vpop.permute.xlu2 %40  }
  0x6f   :  { %104 = vst.msk [vmem:[%s222_s1 + $0x6] ss:$16 sm:$0x3] %vm7_vm0, %v41_v17  }
  0x76   :  { %v59_v18 = vpop.permute.xlu2 %58  }
  0x77   :  { %107 = vst.msk [vmem:[%s222_s1 + $0x9] ss:$16 sm:$0x3] %vm7_vm0, %v59_v18  }
  0x7c   :  { %v23_v19 = vpop.permute.xlu1 %22  }
  0x7d   :  { %v11_v20 = vpop.permute.xlu0 %10   ;;  %101 = vst.msk [vmem:[%s222_s1 + $0x3] ss:$16 sm:$0x3] %vm7_vm0, %v23_v19  }
  0x7e   :  { %99 = vst.msk [vmem:[%s222_s1 + $0x1] ss:$16 sm:$0x3] %vm7_vm0, %v11_v20   ;;  %v77_v22 = vpop.permute.xlu2 %76  }
  0x7f   :  { %110 = vst.msk [vmem:[%s222_s1 + $0xc] ss:$16 sm:$0x3] %vm7_vm0, %v77_v22  }
  0x84   :  { %v29_v23 = vpop.permute.xlu1 %28  }
  0x85   :  { %v17_v24 = vpop.permute.xlu0 %16   ;;  %102 = vst.msk [vmem:[%s222_s1 + $0x4] ss:$16 sm:$0x3] %vm7_vm0, %v29_v23  }
  0x86   :  { %100 = vst.msk [vmem:[%s222_s1 + $0x2] ss:$16 sm:$0x3] %vm7_vm0, %v17_v24   ;;  %v95_v25 = vpop.permute.xlu2 %94  }
  0x87   :  { %113 = vst.msk [vmem:[%s222_s1 + $0xf] ss:$16 sm:$0x3] %vm7_vm0, %v95_v25  }
  0x8c   :  { %v53_v26 = vpop.permute.xlu1 %52  }
  0x8d   :  { %v47_v27 = vpop.permute.xlu0 %46   ;;  %106 = vst.msk [vmem:[%s222_s1 + $0x8] ss:$16 sm:$0x3] %vm7_vm0, %v53_v26  }
  0x8e   :  { %105 = vst.msk [vmem:[%s222_s1 + $0x7] ss:$16 sm:$0x3] %vm7_vm0, %v47_v27  }
  0x94   :  { %v71_v28 = vpop.permute.xlu1 %70  }
  0x95   :  { %v65_v29 = vpop.permute.xlu0 %64   ;;  %109 = vst.msk [vmem:[%s222_s1 + $0xb] ss:$16 sm:$0x3] %vm7_vm0, %v71_v28  }
  0x96   :  { %108 = vst.msk [vmem:[%s222_s1 + $0xa] ss:$16 sm:$0x3] %vm7_vm0, %v65_v29  }
  0x9c   :  { %v89_v30 = vpop.permute.xlu1 %88  }
  0x9d   :  { %v83_v31 = vpop.permute.xlu0 %82   ;;  %112 = vst.msk [vmem:[%s222_s1 + $0xe] ss:$16 sm:$0x3] %vm7_vm0, %v89_v30  }
  0x9e   :  { %111 = vst.msk [vmem:[%s222_s1 + $0xd] ss:$16 sm:$0x3] %vm7_vm0, %v83_v31  }

// kernel: conv_transpose_block.1
= control target key start
LH: loop header
LB: loop body
LE: loop exit
PB: predicated region body
PF: predicated region fallthrough
CT: control target
= control target key end

     0   :  { %s598_s12 = smov 0   ;;  %s686_s0 = inlined_call_operand.vmem [shape: f32[2,8,16], index: 0, kind: input, shape index: {}]   ;;  %s687_s1 = inlined_call_operand.vmem [shape: f32[32,16], index: 1, kind: input, shape index: {}]   ;;  %s688_s2 = inlined_call_operand.vmem [shape: f32[32,1], index: 2, kind: input, shape index: {}]   ;;  %s689_s3 = inlined_call_operand.vmem [shape: f32[2,2,16,128], index: 3, kind: output, shape index: {}]  }
   0x1 LB: > { %s536_s13 = sadd.s32 4294967295, %s573_s12   ;;  %p540_p0 = scmp.ge.s32.totalorder %s573_s12, 1  ;;  %s573_s12 = sphi %s598_s12, %s13_s12  }
   0x2   : > { %p136_p1 = scmp.lt.s32.totalorder %s573_s12, 3 }
   0x4   : > { %p137_p2 = pnand %p540_p0, %p136_p1 }
   0x5   : > { %p159_p3 = scmp.lt.s32.totalorder (!%p137_p2), %s536_s13, 1  ;;  %s576_s18 = smov (!%p137_p2), 1  }
   0x6   : > { %140 = sbr.rel (%p137_p2) target bundleno = 333 (0x14d), region = 32 }
   0xb   : > { %v575_v0 = vmov 0.0   ;;  %s691_s13 = smov (!%p159_p3, %s536_s13), 1  ;;  %vm174_vm1 = vcmask 130048   ;;  %v184_v4 = vld [vmem:[%s687_s1 + $0x10] sm:$0xff]  ;;  %v182_v5 = vld [vmem:[%s687_s1] sm:$0xff]  ;;  %v189_v7 = vld [vmem:[%s688_s2 + $0x8] sm:$0xff] }
   0xc   : > { %168 = vst [vmem:[#allocation2] sm:$0xff] %v575_v0  ;;  %s541_s14 = sshll.u32 %s691_s13, 3  ;;  %v219_v6 = vsel %vm174_vm1, %v184_v4, 0  ;;  %v213_v8 = vsel %vm174_vm1, %v182_v5, 0  ;;  %v577_v9 = vmov 0   ;;  %v185_v12 = vld [vmem:[%s687_s1 + $0x18] sm:$0xff] }
   0xd   : > { %169 = vst [vmem:[#allocation2 + $0x8] sm:$0xff] %v575_v0  ;;  %s162_s17 = scalar_lea.vmem %s686_s0, %s541_s14  ;;  %565 = vset.pattern.permute.xlu1 %v577_v9  ;;  %564 = vset.pattern.permute.xlu0 %v577_v9  ;;  %v624_v10 = vand.u32 4294901760, %v219_v6  ;;  %v626_v11 = vand.u32 4294901760, %v213_v8  ;;  %vm180_vm2 = vcmask 138248   ;;  %v190_v16 = vld [vmem:[%s688_s2 + $0x10] sm:$0xff]  ;;  %v183_v17 = vld [vmem:[%s687_s1 + $0x8] sm:$0xff] }
   0xe   : > { %v170_v1 = vld [vmem:[%s162_s17] sm:$0xff]  ;;  %199 = vperm.xlu1 %565, %v189_v7   ;;  %566 = vset.pattern.permute.xlu2 %v577_v9  ;;  %v222_v18 = vsel %vm174_vm1, %v185_v12, 0  ;;  %v216_v21 = vsel %vm174_vm1, %v183_v17, 0  ;;  %v191_v49 = vld [vmem:[%s688_s2 + $0x18] sm:$0xff]  ;;  %s548_s8 = sshll.u32 %s691_s13, 5 }
   0xf   : > { %vm171_vm0 = vcmp.ge.f32.partialorder %v170_v1, 0.0  ;;  %v172_v2 = vmul.f32 0.1, %v170_v1  ;;  %v632_v14 = vsub.f32 %v219_v6, %v624_v10  ;;  %v635_v15 = vsub.f32 %v213_v8, %v626_v11  ;;  %v188_v30 = vld [vmem:[%s688_s2] sm:$0xff]  ;;  %209 = vperm.xlu2 %566, %v191_v49   ;;  %s677_s11 = scalar_lea.vmem %s689_s3, %s548_s8 }
  0x10   : > { %v646_v23 = vand.u32 4294901760, %v222_v18  ;;  %v250_v25 = vand.u32 4294901760, %v216_v21 }
  0x11   : > { %v173_v3 = vsel %vm171_vm0, %v170_v1, %v172_v2  ;;  %v260_v22 = vand.u32 4294901760, %v632_v14  ;;  %v244_v24 = vand.u32 4294901760, %v635_v15 }
  0x12   : > { %177 = vrot.lane.b32.xlu0 %v173_v3, %s576_s18  ;;  %175 = vst.msk [vmem:[#allocation2] sm:$0xff] %vm174_vm1, %v173_v3  ;;  %v267_v28 = vsub.f32 %v222_v18, %v646_v23  ;;  %v251_v32 = vsub.f32 %v216_v21, %v250_v25 }
  0x13   : > { %v261_v27 = vsub.f32 %v632_v14, %v260_v22  ;;  %v245_v29 = vsub.f32 %v635_v15, %v244_v24 }
  0x14   : > { %v268_v36 = vand.u32 4294901760, %v267_v28  ;;  %v252_v39 = vand.u32 4294901760, %v251_v32 }
  0x15   : > { %v262_v35 = vand.u32 4294901760, %v261_v27  ;;  %v246_v37 = vand.u32 4294901760, %v245_v29 }
  0x16   : > { %204 = vperm.xlu1 %565, %v190_v16   ;;  %v269_v42 = vsub.f32 %v267_v28, %v268_v36  ;;  %v253_v44 = vsub.f32 %v251_v32, %v252_v39 }
  0x18   : > { %v270_v47 = vand.u32 4294901760, %v269_v42  ;;  %v254_v48 = vand.u32 4294901760, %v253_v44 }
  0x19   : > { %v186_v13 = vld [vmem:[#allocation2] sm:$0xff] }
  0x1a   : > { %v240_v20 = vand.u32 4294901760, %v186_v13  ;;  %194 = vperm.xlu0 %564, %v188_v30  }
  0x1c   : > { %v296_v26 = vsub.f32 %v186_v13, %v240_v20 }
  0x1e   : > { %v297_v34 = vand.u32 4294901760, %v296_v26 }
  0x20   : > { %v298_v41 = vsub.f32 %v296_v26, %v297_v34 }
  0x22   : > { %v299_v46 = vand.u32 4294901760, %v298_v41 }
  0x80   : > { %v200_v62 = vpop.permute.xlu1 %199 }
  0x84   : > { %v178_v19 = vpop.permute.xlu0 %177 }
  0x85   : > { %181 = vst.msk [vmem:[#allocation2 + $0x8] sm:$0xff] %vm180_vm2, %v178_v19 }
  0x8c   : > { %v187_v31 = vld [vmem:[#allocation2 + $0x8] sm:$0xff]  ;;  %v195_v57 = vpop.permute.xlu0 %194 }
  0x8d   : > { %v238_v33 = vand.u32 4294901760, %v187_v31 }
  0x8f   : > { %239 = vmatpush.msra.mxu0 %v238_v33  ;;  %549 = vmatpush.msra.mxu2 %v238_v33  ;;  %v290_v38 = vsub.f32 %v187_v31, %v238_v33 }
  0x91   : > { %550 = vmatpush.msra.mxu2 %v240_v20  ;;  %241 = vmatpush.msra.mxu0 %v240_v20  ;;  %v291_v40 = vand.u32 4294901760, %v290_v38 }
  0x92   : > { %263 = vmatmul.f32.vlgmr.msra.gmra.mxu2 %v262_v35  ;;  %247 = vmatmul.f32.vlgmr.msra.gmra.mxu0 %v246_v37 }
  0x93   : > { %334 = vmatpush.msrb.mxu2 %v290_v38  ;;  %419 = vmatpush.msrb.mxu0 %v291_v40  ;;  %v292_v43 = vsub.f32 %v290_v38, %v291_v40 }
  0x95   : > { %v293_v45 = vand.u32 4294901760, %v292_v43  ;;  %337 = vmatpush.msrb.mxu2 %v296_v26  ;;  %423 = vmatpush.msrb.mxu0 %v297_v34 }
  0x97   : > { %294 = vmatpush.msra.mxu1 %v293_v45  ;;  %551 = vmatpush.msra.mxu3 %v293_v45 }
  0x99   : > { %300 = vmatpush.msra.mxu1 %v299_v46  ;;  %552 = vmatpush.msra.mxu3 %v299_v46 }
  0x9a   : > { %271 = vmatmul.f32.gmra.mxu2 %v270_v47  ;;  %310 = vmatmul.f32.vlgmr.msra.gmra.mxu3 %v624_v10 }
  0x9b   : > { %374 = vmatpush.msrb.mxu3 %v238_v33  ;;  %456 = vmatpush.msrb.mxu1 %v238_v33 }
  0x9c   : > { %302 = vmatmul.f32.vlgmr.msra.gmra.mxu1 %v626_v11  ;;  %255 = vmatmul.f32.gmra.mxu0 %v254_v48 }
  0x9d   : > { %376 = vmatpush.msrb.mxu3 %v240_v20  ;;  %458 = vmatpush.msrb.mxu1 %v240_v20  ;;  %v210_v20 = vpop.permute.xlu2 %209 }
  0xa2   : > { %314 = vmatmul.f32.gmra.mxu3 %v646_v23  ;;  %340 = vmatmul.f32.vlgmr.msrb.gmra.mxu2 %v635_v15 }
  0xa4   : > { %306 = vmatmul.f32.gmra.mxu1 %v250_v25  ;;  %425 = vmatmul.f32.vlgmr.msrb.gmra.mxu0 %v626_v11 }
  0xaa   : > { %345 = vmatmul.f32.gmra.mxu2 %v251_v32  ;;  %380 = vmatmul.f32.vlgmr.msrb.gmra.mxu3 %v244_v24 }
  0xac   : > { %460 = vmatmul.f32.vlgmr.msrb.gmra.mxu1 %v626_v11  ;;  %429 = vmatmul.f32.gmra.mxu0 %v250_v25 }
  0xb2   : > { %350 = vmatmul.f32.gmra.mxu2 %v632_v14  ;;  %386 = vmatmul.f32.gmra.mxu3 %v252_v39 }
  0xb4   : > { %464 = vmatmul.f32.gmra.mxu1 %v250_v25  ;;  %433 = vmatmul.f32.gmra.mxu0 %v624_v10 }
  0xba   : > { %355 = vmatmul.f32.gmra.mxu2 %v267_v28  ;;  %392 = vmatmul.f32.gmra.mxu3 %v260_v22 }
  0xbc   : > { %468 = vmatmul.f32.gmra.mxu1 %v624_v10  ;;  %437 = vmatmul.f32.gmra.mxu0 %v646_v23  ;;  %v205_v10 = vpop.permute.xlu1 %204 }
  0xc2   : > { %398 = vmatmul.f32.gmra.mxu3 %v268_v36 }
  0xc4   : > { %472 = vmatmul.f32.gmra.mxu1 %v646_v23 }
 0x10f   : > { %v248_v50 = vpop.f32.mrf.mxu0 }
 0x110   : > { %v249_v60 = vadd.f32 %v248_v50, %v195_v57 }
 0x115   : > { %v264_v51 = vpop.f32.mrf.mxu2 }
 0x116   : > { %v265_v14 = vadd.f32 %v264_v51, %v205_v10 }
 0x119   : > { %v303_v52 = vpop.f32.mrf.mxu1  ;;  %v256_v53 = vpop.f32.mrf.mxu0 }
 0x11a   : > { %v304_v0 = vadd.f32 %v303_v52, %v249_v60  ;;  %v257_v4 = vadd.f32 %v256_v53, %v200_v62 }
 0x11d   : > { %v272_v54 = vpop.f32.mrf.mxu2  ;;  %v311_v55 = vpop.f32.mrf.mxu3 }
 0x11e   : > { %v312_v18 = vadd.f32 %v311_v55, %v265_v14  ;;  %v273_v25 = vadd.f32 %v272_v54, %v210_v20 }
 0x121   : > { %v307_v56 = vpop.f32.mrf.mxu1  ;;  %v426_v61 = vpop.f32.mrf.mxu0 }
 0x122   : > { %v308_v8 = vadd.f32 %v307_v56, %v257_v4 }
 0x125   : > { %v315_v58 = vpop.f32.mrf.mxu3  ;;  %v341_v59 = vpop.f32.mrf.mxu2 }
 0x126   : > { %v342_v1 = vadd.f32 %v341_v59, %v304_v0  ;;  %v316_v29 = vadd.f32 %v315_v58, %v273_v25 }
 0x129   : > { %v461_v63 = vpop.f32.mrf.mxu1  ;;  %v430_v7 = vpop.f32.mrf.mxu0 }
 0x12d   : > { %v346_v2 = vpop.f32.mrf.mxu2  ;;  %v381_v3 = vpop.f32.mrf.mxu3 }
 0x12e   : > { %v382_v5 = vadd.f32 %v381_v3, %v342_v1  ;;  %v347_v12 = vadd.f32 %v346_v2, %v308_v8 }
 0x130   : > { %v427_v6 = vadd.f32 %v426_v61, %v382_v5 }
 0x131   : > { %v465_v11 = vpop.f32.mrf.mxu1  ;;  %v434_v21 = vpop.f32.mrf.mxu0 }
 0x132   : > { %v462_v9 = vadd.f32 %v461_v63, %v427_v6 }
 0x134   : > { %476 = vst [vmem:[%s677_s11] sm:$0xff] %v462_v9 }
 0x135   : > { %v387_v13 = vpop.f32.mrf.mxu3  ;;  %v351_v16 = vpop.f32.mrf.mxu2 }
 0x136   : > { %v388_v15 = vadd.f32 %v387_v13, %v347_v12  ;;  %v352_v22 = vadd.f32 %v351_v16, %v312_v18 }
 0x138   : > { %v431_v17 = vadd.f32 %v430_v7, %v388_v15 }
 0x139   : > { %v469_v24 = vpop.f32.mrf.mxu1  ;;  %v438_v33 = vpop.f32.mrf.mxu0 }
 0x13a   : > { %v466_v19 = vadd.f32 %v465_v11, %v431_v17 }
 0x13c   : > { %477 = vst [vmem:[%s677_s11 + $0x8] sm:$0xff] %v466_v19 }
 0x13d   : > { %v393_v23 = vpop.f32.mrf.mxu3  ;;  %v356_v28 = vpop.f32.mrf.mxu2 }
 0x13e   : > { %v394_v26 = vadd.f32 %v393_v23, %v352_v22  ;;  %v357_v31 = vadd.f32 %v356_v28, %v316_v29 }
 0x140   : > { %v435_v27 = vadd.f32 %v434_v21, %v394_v26 }
 0x141   : > { %v473_v35 = vpop.f32.mrf.mxu1 }
 0x142   : > { %v470_v30 = vadd.f32 %v469_v24, %v435_v27 }
 0x144   : > { %544 = vst [vmem:[%s677_s11 + $0x10] sm:$0xff] %v470_v30 }
 0x145   : > { %v399_v32 = vpop.f32.mrf.mxu3 }
 0x146   : > { %v400_v34 = vadd.f32 %v399_v32, %v357_v31 }
 0x148   : > { %v439_v36 = vadd.f32 %v438_v33, %v400_v34 }
 0x14a   : > { %v474_v37 = vadd.f32 %v473_v35, %v439_v36 }
 0x14c   : > { %545 = vst [vmem:[%s677_s11 + $0x18] sm:$0xff] %v474_v37 }
 0x14d PF: > { %s13_s12 = sadd.s32 1, %s573_s12  }
 0x14e   : > { %p10_p4 = scmp.ge.s32.totalorder %s13_s12, 4  }
 0x150   :  { %12 = sbr.rel (!%p10_p4) target bundleno = 1 (0x1), region = 63 }

</bundles_post_ra>
